<compile_context>
chip_gen: v6e
topology: v6e:2x2x1
jax: 0.10.0
libtpu: 0.0.40
codegen_flags: <defaults>
</compile_context>

<pallas_src>
import math

import jax
import jax.numpy as jnp
from jax import lax
from jax.experimental import pallas as pl
from jax.experimental.pallas import tpu as pltpu


def _pick_query_tile(seq_len, max_tq=256):
    if seq_len <= max_tq:
        return seq_len
    for tq in (max_tq, 128, 64, 32, 16, 8):
        if seq_len % tq == 0:
            return tq
    return seq_len


def _pick_head_group(num_heads, head_dim, target_width=256):
    g = max(1, min(num_heads, target_width // max(head_dim, 1)))
    while g > 1 and num_heads % g != 0:
        g -= 1
    return g


def _default_vmem_limit():
    limit = 64 * 1024 * 1024
    try:
        cap = int(pltpu.get_tpu_info().vmem_capacity_bytes)
        limit = min(100 * 1024 * 1024, max(32 * 1024 * 1024, int(cap * 0.85)))
    except Exception:
        pass
    return limit


def roformer_attention(x, params, cdr_mask=None, *, return_attn=True,
                       matmul_dtype=jnp.float32, attn_dtype=jnp.float32,
                       tq=None, heads_per_step=None, vmem_limit_bytes=None):
    """Pallas implementation of RoformerAttention.forward (eval mode)."""
    B, S, E = x.shape
    nh = int(params["num_heads"])
    hd = E // nh
    assert hd * nh == E and hd % 2 == 0, "head_dim must be even and divide E"
    half = hd // 2

    TQ = _pick_query_tile(S) if tq is None else int(tq)
    assert S % TQ == 0 and (TQ == S or TQ % 8 == 0), "bad query tile"
    G = _pick_head_group(nh, hd) if heads_per_step is None else int(heads_per_step)
    assert nh % G == 0, "heads_per_step must divide num_heads"
    n_q = S // TQ
    n_hg = nh // G
    gw = G * hd
    if vmem_limit_bytes is None:
        vmem_limit_bytes = _default_vmem_limit()

    # ---- rotary tables (glue, plain JAX, computed once) ----
    inv_freq = 1.0 / (10000.0 ** (jnp.arange(half, dtype=jnp.float32) / half))
    pos = jnp.arange(S, dtype=jnp.float32)
    ang = inv_freq[:, None] * pos[None, :]                     # (half, S)
    cos = jnp.cos(ang).T                                       # (S, half)
    sin = jnp.sin(ang).T

    # ---- CDR mask: fold cdr_weight, specialize the None path ----
    has_mask = cdr_mask is not None
    mask2d = None
    if has_mask:
        if cdr_mask.ndim == 2:
            mask2d = cdr_mask.astype(jnp.float32)
        else:
            # create_cdr_mask broadcasts a single (S, S) mask over (B, nh).
            mask2d = cdr_mask[0, 0].astype(jnp.float32)
        mask2d = mask2d * params["cdr_weight"].astype(jnp.float32)

    # ---- weights: torch Linear stores W as (out, in); y = x @ W.T + b ----
    cd = matmul_dtype
    inv_sqrt = 1.0 / math.sqrt(hd)
    wq = (params["wq"].T * inv_sqrt).reshape(E, n_hg, gw).transpose(1, 0, 2).astype(cd)
    bq = (params["bq"] * inv_sqrt).reshape(n_hg, 1, gw).astype(jnp.float32)
    wk_g = params["wk"].T.reshape(E, n_hg, gw).transpose(1, 0, 2)
    wv_g = params["wv"].T.reshape(E, n_hg, gw).transpose(1, 0, 2)
    wkv = jnp.concatenate([wk_g, wv_g], axis=-1).astype(cd)    # (n_hg, E, 2*gw)
    bkv = jnp.concatenate([params["bk"].reshape(n_hg, 1, gw),
                           params["bv"].reshape(n_hg, 1, gw)],
                          axis=-1).astype(jnp.float32)         # (n_hg, 1, 2*gw)
    wo = params["wo"].T.reshape(n_hg, gw, E).astype(cd)        # (n_hg, gw, E)
    bo = params["bo"].reshape(1, E).astype(jnp.float32)
    x_in = x.astype(cd)

    dn = (((1,), (1,)), ((), ()))  # contract last dim of both operands

    def kernel(*refs):
        (x_ref, wq_ref, bq_ref, wkv_ref, bkv_ref, wo_ref, bo_ref,
         cos_ref, sin_ref) = refs[:9]
        idx = 9
        mask_ref = None
        if has_mask:
            mask_ref = refs[idx]
            idx += 1
        out_ref = refs[idx]
        idx += 1
        attn_ref = refs[idx] if return_attn else None

        qi = pl.program_id(1)
        hg = pl.program_id(2)
        q_start = pl.multiple_of(qi * TQ, TQ)

        x_kv = x_ref[0]                                        # (S, E)
        x_q = x_kv if TQ == S else x_ref[0, pl.ds(q_start, TQ), :]   # (TQ, E)

        # Projections (MXU, f32 accumulate).  1/sqrt(hd) already folded in Wq/bq.
        q_full = jnp.dot(x_q, wq_ref[0],
                         preferred_element_type=jnp.float32) + bq_ref[0]   # (TQ, gw)
        kv_full = jnp.dot(x_kv, wkv_ref[0],
                          preferred_element_type=jnp.float32) + bkv_ref[0]  # (S, 2*gw)
        k_full = kv_full[:, :gw]
        v_full = kv_full[:, gw:]

        cos_k = cos_ref[...]                                   # (S, half)
        sin_k = sin_ref[...]
        if TQ == S:
            cos_q, sin_q = cos_k, sin_k
        else:
            cos_q = cos_ref[pl.ds(q_start, TQ), :]             # (TQ, half)
            sin_q = sin_ref[pl.ds(q_start, TQ), :]

        head_outs = []
        for g in range(G):
            q = q_full[:, g * hd:(g + 1) * hd]
            k = k_full[:, g * hd:(g + 1) * hd]
            v = v_full[:, g * hd:(g + 1) * hd]
            q1, q2 = q[:, :half], q[:, half:]
            k1, k2 = k[:, :half], k[:, half:]
            # Rotated full-width q/k -> single K=hd score matmul per head.
            q_rot = jnp.concatenate([q1 * cos_q - q2 * sin_q,
                                     q1 * sin_q + q2 * cos_q], axis=-1)
            k_rot = jnp.concatenate([k1 * cos_k - k2 * sin_k,
                                     k1 * sin_k + k2 * cos_k], axis=-1)
            scores = lax.dot_general(q_rot, k_rot, dn,
                                     preferred_element_type=jnp.float32)   # (TQ, S)
            if has_mask:
                scores = scores + mask_ref[...]                # cdr_weight pre-folded

            m = jnp.max(scores, axis=-1, keepdims=True)
            e = jnp.exp(scores - m)
            denom = jnp.sum(e, axis=-1, keepdims=True)
            if return_attn:
                w = e / denom                                  # exact: rows sum to 1
                attn_ref[0, g] = w.astype(attn_ref.dtype)
            else:
                w = e * pl.reciprocal(denom, approx=True)      # EUP slot
            head_outs.append(jnp.dot(w, v, preferred_element_type=jnp.float32))

        head_cat = head_outs[0] if G == 1 else jnp.concatenate(head_outs, axis=-1)
        proj = jnp.dot(head_cat.astype(wo_ref.dtype), wo_ref[0],
                       preferred_element_type=jnp.float32)     # (TQ, E)

        # Accumulate the output projection directly into the resident out block.
        @pl.when(hg == 0)
        def _():
            out_ref[...] = jnp.zeros_like(out_ref)

        out_ref[0] += proj

        @pl.when(hg == pl.num_programs(2) - 1)
        def _():
            out_ref[0] += bo_ref[...]

    # ---- BlockSpecs ----
    x_map = lambda b, qi, hg: (b, 0, 0)
    head_map = lambda b, qi, hg: (hg, 0, 0)
    const2 = lambda b, qi, hg: (0, 0)
    qrow_map = lambda b, qi, hg: (qi, 0)

    in_specs = [
        pl.BlockSpec((1, S, E), x_map),                        # x (full seq, for K/V)
        pl.BlockSpec((1, E, gw), head_map),                    # Wq (head group)
        pl.BlockSpec((1, 1, gw), head_map),                    # bq
        pl.BlockSpec((1, E, 2 * gw), head_map),                # Wk|Wv fused
        pl.BlockSpec((1, 1, 2 * gw), head_map),                # bk|bv fused
        pl.BlockSpec((1, gw, E), head_map),                    # Wo (head group)
        pl.BlockSpec((1, E), const2),                          # bo
        pl.BlockSpec((S, half), const2),                       # cos
        pl.BlockSpec((S, half), const2),                       # sin
    ]
    operands = [x_in, wq, bq, wkv, bkv, wo, bo, cos, sin]
    if has_mask:
        in_specs.append(pl.BlockSpec((TQ, S), qrow_map))       # cdr mask (q-tile rows)
        operands.append(mask2d)

    out_specs = [pl.BlockSpec((1, TQ, E), lambda b, qi, hg: (b, qi, 0))]
    out_shapes = [jax.ShapeDtypeStruct((B, S, E), jnp.float32)]
    if return_attn:
        out_specs.append(pl.BlockSpec((1, G, TQ, S),
                                      lambda b, qi, hg: (b, hg, qi, 0)))
        out_shapes.append(jax.ShapeDtypeStruct((B, nh, S, S), attn_dtype))

    grid_spec = pltpu.PrefetchScalarGridSpec(
        num_scalar_prefetch=0,
        grid=(B, n_q, n_hg),            # batch & query tiles parallel, head group = reduction
        in_specs=in_specs,
        out_specs=out_specs,
        scratch_shapes=[],
    )

    results = pl.pallas_call(
        kernel,
        out_shape=tuple(out_shapes),
        grid_spec=grid_spec,
        compiler_params=pltpu.CompilerParams(
            dimension_semantics=("parallel", "parallel", "arbitrary"),
            vmem_limit_bytes=int(vmem_limit_bytes)),
    )(*operands)

    if return_attn:
        return results[0], results[1]
    return results[0]


def roformer_reference(x, params, cdr_mask=None):
    """Pure-JAX replica of the PyTorch forward (eval mode), for verification."""
    B, S, E = x.shape
    nh = params["num_heads"]
    hd = E // nh
    half = hd // 2

    def lin(t, w, b):
        return t @ w.T + b

    Q = lin(x, params["wq"], params["bq"]).reshape(B, S, nh, hd).transpose(0, 2, 1, 3)
    K = lin(x, params["wk"], params["bk"]).reshape(B, S, nh, hd).transpose(0, 2, 1, 3)
    V = lin(x, params["wv"], params["bv"]).reshape(B, S, nh, hd).transpose(0, 2, 1, 3)

    inv_freq = 1.0 / (10000.0 ** (jnp.arange(half, dtype=jnp.float32) / half))
    pos = jnp.arange(S, dtype=jnp.float32)
    ang = inv_freq[:, None] * pos[None, :]
    cos = jnp.cos(ang).T[None, None]
    sin = jnp.sin(ang).T[None, None]

    def rope(t):
        t1, t2 = t[..., :half], t[..., half:]
        return jnp.concatenate([t1 * cos - t2 * sin, t1 * sin + t2 * cos], axis=-1)

    Qr, Kr = rope(Q), rope(K)
    scores = jnp.einsum("bhqd,bhkd->bhqk", Qr, Kr) / math.sqrt(hd)
    if cdr_mask is not None:
        scores = scores + cdr_mask * params["cdr_weight"]
    w = jax.nn.softmax(scores, axis=-1)
    out = jnp.einsum("bhqk,bhkd->bhqd", w, V)
    out = out.transpose(0, 2, 1, 3).reshape(B, S, E)
    out = lin(out, params["wo"], params["bo"])
    return out, w


def init_params(key, embed_dim, num_heads, init_cdr_weight=2.0):
    """Deterministic torch.nn.Linear-style init (uniform ±1/sqrt(fan_in))."""
    bound = 1.0 / math.sqrt(embed_dim)
    keys = jax.random.split(key, 8)
    u = lambda k, shape: jax.random.uniform(k, shape, jnp.float32, -bound, bound)
    return {
        "num_heads": num_heads,
        "wq": u(keys[0], (embed_dim, embed_dim)), "bq": u(keys[1], (embed_dim,)),
        "wk": u(keys[2], (embed_dim, embed_dim)), "bk": u(keys[3], (embed_dim,)),
        "wv": u(keys[4], (embed_dim, embed_dim)), "bv": u(keys[5], (embed_dim,)),
        "wo": u(keys[6], (embed_dim, embed_dim)), "bo": u(keys[7], (embed_dim,)),
        "cdr_weight": jnp.array(init_cdr_weight, jnp.float32),
    }


if __name__ == "__main__":
    B, S, E, NH = 2, 16, 32, 2            # head_dim = 16 (even), small shapes
    key = jax.random.PRNGKey(0)
    kx, kp = jax.random.split(key)

    params = init_params(kp, E, NH)
    x = jax.random.normal(kx, (B, S, E), jnp.float32)

    # cdr mask like create_cdr_mask: diagonal 1s at a few positions,
    # broadcast to (B, num_heads, S, S)
    diag = jnp.zeros((S, S), jnp.float32)
    for p in (2, 3, 5, 11):
        diag = diag.at[p, p].set(1.0)
    cdr_mask = jnp.broadcast_to(diag[None, None], (B, NH, S, S))

    out_ref, attn_ref = roformer_reference(x, params, cdr_mask)

    # 1) f32, masked, attention weights returned (exact softmax divide).
    out, attn = roformer_attention(x, params, cdr_mask, return_attn=True)
    jax.block_until_ready((out, attn))
    assert out.shape == (B, S, E) and attn.shape == (B, NH, S, S)
    assert jnp.allclose(out, out_ref, rtol=5e-3, atol=5e-3), "output mismatch"
    assert jnp.allclose(attn, attn_ref, rtol=5e-3, atol=5e-3), "attn mismatch"

    # 2) exercise the query-tile grid axis (TQ < S).
    out_t, attn_t = roformer_attention(x, params, cdr_mask, return_attn=True, tq=8)
    jax.block_until_ready((out_t, attn_t))
    assert jnp.allclose(out_t, out_ref, rtol=5e-3, atol=5e-3), "tiled output mismatch"
    assert jnp.allclose(attn_t, attn_ref, rtol=5e-3, atol=5e-3), "tiled attn mismatch"

    # 3) perf path: bf16 weights/x, no mask, no attention-weights store.
    out_ref_nm, _ = roformer_reference(x, params, None)
    out_bf = roformer_attention(x, params, None, return_attn=False,
                                matmul_dtype=jnp.bfloat16)
    jax.block_until_ready(out_bf)
    assert out_bf.shape == (B, S, E)
    assert jnp.allclose(out_bf, out_ref_nm, rtol=3e-2, atol=3e-2), "bf16 output mismatch"

    print("KERNEL_OK")
</pallas_src>

<mosaic_0001>
module attributes {stable_mosaic.version = 11 : i64} {
  func.func @kernel(%arg0: i32, %arg1: i32, %arg2: i32, %arg3: memref<1x16x32xf32, #tpu.memory_space<vmem>>, %arg4: memref<1x32x32xf32, #tpu.memory_space<vmem>>, %arg5: memref<1x1x32xf32, #tpu.memory_space<vmem>>, %arg6: memref<1x32x64xf32, #tpu.memory_space<vmem>>, %arg7: memref<1x1x64xf32, #tpu.memory_space<vmem>>, %arg8: memref<1x32x32xf32, #tpu.memory_space<vmem>>, %arg9: memref<1x32xf32, #tpu.memory_space<vmem>>, %arg10: memref<16x8xf32, #tpu.memory_space<vmem>>, %arg11: memref<16x8xf32, #tpu.memory_space<vmem>>, %arg12: memref<16x16xf32, #tpu.memory_space<vmem>>, %arg13: memref<1x16x32xf32, #tpu.memory_space<vmem>>, %arg14: memref<1x2x16x16xf32, #tpu.memory_space<vmem>>) attributes {dimension_semantics = [#tpu.dimension_semantics<parallel>, #tpu.dimension_semantics<parallel>, #tpu.dimension_semantics<arbitrary>], iteration_bounds = array<i64: 2, 1, 1>, scalar_prefetch = 0 : i64, scratch_operands = 0 : i64, tpu.core_type = #tpu.core_type<tc>, window_params = [{transform_indices = @transform_0, window_bounds = array<i64: 1, 16, 32>}, {transform_indices = @transform_1, window_bounds = array<i64: 1, 32, 32>}, {transform_indices = @transform_2, window_bounds = array<i64: 1, 1, 32>}, {transform_indices = @transform_3, window_bounds = array<i64: 1, 32, 64>}, {transform_indices = @transform_4, window_bounds = array<i64: 1, 1, 64>}, {transform_indices = @transform_5, window_bounds = array<i64: 1, 32, 32>}, {pipeline_mode = #tpu.pipeline_mode<synchronous>, transform_indices = @transform_6, window_bounds = array<i64: 1, 32>}, {pipeline_mode = #tpu.pipeline_mode<synchronous>, transform_indices = @transform_7, window_bounds = array<i64: 16, 8>}, {pipeline_mode = #tpu.pipeline_mode<synchronous>, transform_indices = @transform_8, window_bounds = array<i64: 16, 8>}, {transform_indices = @transform_9, window_bounds = array<i64: 16, 16>}, {transform_indices = @transform_10, window_bounds = array<i64: 1, 16, 32>}, {transform_indices = @transform_11, window_bounds = array<i64: 1, 2, 16, 16>}]} {
    %c0 = arith.constant 0 : index
    %c0_0 = arith.constant 0 : index
    %c0_1 = arith.constant 0 : index
    %0 = vector.load %arg3[%c0, %c0_0, %c0_1] : memref<1x16x32xf32, #tpu.memory_space<vmem>>, vector<1x16x32xf32>
    %1 = vector.shape_cast %0 : vector<1x16x32xf32> to vector<16x32xf32>
    %c0_2 = arith.constant 0 : index
    %c0_3 = arith.constant 0 : index
    %c0_4 = arith.constant 0 : index
    %2 = vector.load %arg4[%c0_2, %c0_3, %c0_4] : memref<1x32x32xf32, #tpu.memory_space<vmem>>, vector<1x32x32xf32>
    %3 = vector.shape_cast %2 : vector<1x32x32xf32> to vector<32x32xf32>
    %cst = arith.constant dense<0.000000e+00> : vector<16x32xf32>
    %4 = tpu.matmul %1, %3, %cst {dimension_numbers = #tpu.dot_dimension_numbers<[1], [0], [0], [1], [0, 0, 1, 1], [], []>} : vector<16x32xf32>, vector<32x32xf32>, vector<16x32xf32> -> vector<16x32xf32>
    %c0_5 = arith.constant 0 : index
    %c0_6 = arith.constant 0 : index
    %c0_7 = arith.constant 0 : index
    %5 = vector.load %arg5[%c0_5, %c0_6, %c0_7] : memref<1x1x32xf32, #tpu.memory_space<vmem>>, vector<1x1x32xf32>
    %6 = vector.shape_cast %5 : vector<1x1x32xf32> to vector<1x32xf32>
    %7 = vector.broadcast %6 : vector<1x32xf32> to vector<16x32xf32>
    %8 = arith.addf %4, %7 : vector<16x32xf32>
    %c0_8 = arith.constant 0 : index
    %c0_9 = arith.constant 0 : index
    %c0_10 = arith.constant 0 : index
    %9 = vector.load %arg6[%c0_8, %c0_9, %c0_10] : memref<1x32x64xf32, #tpu.memory_space<vmem>>, vector<1x32x64xf32>
    %10 = vector.shape_cast %9 : vector<1x32x64xf32> to vector<32x64xf32>
    %cst_11 = arith.constant dense<0.000000e+00> : vector<16x64xf32>
    %11 = tpu.matmul %1, %10, %cst_11 {dimension_numbers = #tpu.dot_dimension_numbers<[1], [0], [0], [1], [0, 0, 1, 1], [], []>} : vector<16x32xf32>, vector<32x64xf32>, vector<16x64xf32> -> vector<16x64xf32>
    %c0_12 = arith.constant 0 : index
    %c0_13 = arith.constant 0 : index
    %c0_14 = arith.constant 0 : index
    %12 = vector.load %arg7[%c0_12, %c0_13, %c0_14] : memref<1x1x64xf32, #tpu.memory_space<vmem>>, vector<1x1x64xf32>
    %13 = vector.shape_cast %12 : vector<1x1x64xf32> to vector<1x64xf32>
    %14 = vector.broadcast %13 : vector<1x64xf32> to vector<16x64xf32>
    %15 = arith.addf %11, %14 : vector<16x64xf32>
    %16 = vector.extract_strided_slice %15 {offsets = [0, 0], sizes = [16, 32], strides = [1, 1]} : vector<16x64xf32> to vector<16x32xf32>
    %17 = vector.extract_strided_slice %15 {offsets = [0, 32], sizes = [16, 32], strides = [1, 1]} : vector<16x64xf32> to vector<16x32xf32>
    %c0_15 = arith.constant 0 : index
    %c0_16 = arith.constant 0 : index
    %18 = vector.load %arg10[%c0_15, %c0_16] : memref<16x8xf32, #tpu.memory_space<vmem>>, vector<16x8xf32>
    %c0_17 = arith.constant 0 : index
    %c0_18 = arith.constant 0 : index
    %19 = vector.load %arg11[%c0_17, %c0_18] : memref<16x8xf32, #tpu.memory_space<vmem>>, vector<16x8xf32>
    %20 = vector.extract_strided_slice %8 {offsets = [0, 0], sizes = [16, 16], strides = [1, 1]} : vector<16x32xf32> to vector<16x16xf32>
    %21 = vector.extract_strided_slice %16 {offsets = [0, 0], sizes = [16, 16], strides = [1, 1]} : vector<16x32xf32> to vector<16x16xf32>
    %22 = vector.extract_strided_slice %17 {offsets = [0, 0], sizes = [16, 16], strides = [1, 1]} : vector<16x32xf32> to vector<16x16xf32>
    %23 = vector.extract_strided_slice %20 {offsets = [0, 0], sizes = [16, 8], strides = [1, 1]} : vector<16x16xf32> to vector<16x8xf32>
    %24 = vector.extract_strided_slice %20 {offsets = [0, 8], sizes = [16, 8], strides = [1, 1]} : vector<16x16xf32> to vector<16x8xf32>
    %25 = vector.extract_strided_slice %21 {offsets = [0, 0], sizes = [16, 8], strides = [1, 1]} : vector<16x16xf32> to vector<16x8xf32>
    %26 = vector.extract_strided_slice %21 {offsets = [0, 8], sizes = [16, 8], strides = [1, 1]} : vector<16x16xf32> to vector<16x8xf32>
    %27 = arith.mulf %23, %18 : vector<16x8xf32>
    %28 = arith.mulf %24, %19 : vector<16x8xf32>
    %29 = arith.subf %27, %28 : vector<16x8xf32>
    %30 = arith.mulf %23, %19 : vector<16x8xf32>
    %31 = arith.mulf %24, %18 : vector<16x8xf32>
    %32 = arith.addf %30, %31 : vector<16x8xf32>
    %33 = tpu.concatenate %29, %32 in 1 : vector<16x8xf32>, vector<16x8xf32> -> vector<16x16xf32>
    %34 = arith.mulf %25, %18 : vector<16x8xf32>
    %35 = arith.mulf %26, %19 : vector<16x8xf32>
    %36 = arith.subf %34, %35 : vector<16x8xf32>
    %37 = arith.mulf %25, %19 : vector<16x8xf32>
    %38 = arith.mulf %26, %18 : vector<16x8xf32>
    %39 = arith.addf %37, %38 : vector<16x8xf32>
    %40 = tpu.concatenate %36, %39 in 1 : vector<16x8xf32>, vector<16x8xf32> -> vector<16x16xf32>
    %cst_19 = arith.constant dense<0.000000e+00> : vector<16x16xf32>
    %41 = tpu.matmul %33, %40, %cst_19 {dimension_numbers = #tpu.dot_dimension_numbers<[1], [1], [0], [0], [0, 0, 1, 0], [], []>} : vector<16x16xf32>, vector<16x16xf32>, vector<16x16xf32> -> vector<16x16xf32>
    %c0_20 = arith.constant 0 : index
    %c0_21 = arith.constant 0 : index
    %42 = vector.load %arg12[%c0_20, %c0_21] : memref<16x16xf32, #tpu.memory_space<vmem>>, vector<16x16xf32>
    %43 = arith.addf %41, %42 : vector<16x16xf32>
    %cst_22 = arith.constant dense<0xFF800000> : vector<16xf32>
    %44 = vector.multi_reduction <maximumf>, %43, %cst_22 [1] : vector<16x16xf32> to vector<16xf32>
    %45 = vector.shape_cast %44 : vector<16xf32> to vector<16x1xf32>
    %46 = vector.broadcast %45 : vector<16x1xf32> to vector<16x16xf32>
    %47 = arith.subf %43, %46 : vector<16x16xf32>
    %48 = math.exp %47 : vector<16x16xf32>
    %cst_23 = arith.constant dense<0.000000e+00> : vector<16xf32>
    %49 = vector.multi_reduction <add>, %48, %cst_23 [1] : vector<16x16xf32> to vector<16xf32>
    %50 = vector.shape_cast %49 : vector<16xf32> to vector<16x1xf32>
    %51 = vector.broadcast %50 : vector<16x1xf32> to vector<16x16xf32>
    %52 = arith.divf %48, %51 : vector<16x16xf32>
    %c0_24 = arith.constant 0 : index
    %c0_25 = arith.constant 0 : index
    %c0_26 = arith.constant 0 : index
    %c0_27 = arith.constant 0 : index
    %53 = vector.load %arg14[%c0_24, %c0_25, %c0_26, %c0_27] : memref<1x2x16x16xf32, #tpu.memory_space<vmem>>, vector<1x1x16x16xf32>
    %54 = vector.shape_cast %53 : vector<1x1x16x16xf32> to vector<16x16xf32>
    %55 = vector.shape_cast %52 : vector<16x16xf32> to vector<1x1x16x16xf32>
    tpu.vector_store %arg14[%c0_24, %c0_25, %c0_26, %c0_27], %55 {strides = array<i32>} : memref<1x2x16x16xf32, #tpu.memory_space<vmem>>, vector<1x1x16x16xf32>,
    %cst_28 = arith.constant dense<0.000000e+00> : vector<16x16xf32>
    %56 = tpu.matmul %52, %22, %cst_28 {dimension_numbers = #tpu.dot_dimension_numbers<[1], [0], [0], [1], [0, 0, 1, 1], [], []>} : vector<16x16xf32>, vector<16x16xf32>, vector<16x16xf32> -> vector<16x16xf32>
    %57 = vector.extract_strided_slice %8 {offsets = [0, 16], sizes = [16, 16], strides = [1, 1]} : vector<16x32xf32> to vector<16x16xf32>
    %58 = vector.extract_strided_slice %16 {offsets = [0, 16], sizes = [16, 16], strides = [1, 1]} : vector<16x32xf32> to vector<16x16xf32>
    %59 = vector.extract_strided_slice %17 {offsets = [0, 16], sizes = [16, 16], strides = [1, 1]} : vector<16x32xf32> to vector<16x16xf32>
    %60 = vector.extract_strided_slice %57 {offsets = [0, 0], sizes = [16, 8], strides = [1, 1]} : vector<16x16xf32> to vector<16x8xf32>
    %61 = vector.extract_strided_slice %57 {offsets = [0, 8], sizes = [16, 8], strides = [1, 1]} : vector<16x16xf32> to vector<16x8xf32>
    %62 = vector.extract_strided_slice %58 {offsets = [0, 0], sizes = [16, 8], strides = [1, 1]} : vector<16x16xf32> to vector<16x8xf32>
    %63 = vector.extract_strided_slice %58 {offsets = [0, 8], sizes = [16, 8], strides = [1, 1]} : vector<16x16xf32> to vector<16x8xf32>
    %64 = arith.mulf %60, %18 : vector<16x8xf32>
    %65 = arith.mulf %61, %19 : vector<16x8xf32>
    %66 = arith.subf %64, %65 : vector<16x8xf32>
    %67 = arith.mulf %60, %19 : vector<16x8xf32>
    %68 = arith.mulf %61, %18 : vector<16x8xf32>
    %69 = arith.addf %67, %68 : vector<16x8xf32>
    %70 = tpu.concatenate %66, %69 in 1 : vector<16x8xf32>, vector<16x8xf32> -> vector<16x16xf32>
    %71 = arith.mulf %62, %18 : vector<16x8xf32>
    %72 = arith.mulf %63, %19 : vector<16x8xf32>
    %73 = arith.subf %71, %72 : vector<16x8xf32>
    %74 = arith.mulf %62, %19 : vector<16x8xf32>
    %75 = arith.mulf %63, %18 : vector<16x8xf32>
    %76 = arith.addf %74, %75 : vector<16x8xf32>
    %77 = tpu.concatenate %73, %76 in 1 : vector<16x8xf32>, vector<16x8xf32> -> vector<16x16xf32>
    %cst_29 = arith.constant dense<0.000000e+00> : vector<16x16xf32>
    %78 = tpu.matmul %70, %77, %cst_29 {dimension_numbers = #tpu.dot_dimension_numbers<[1], [1], [0], [0], [0, 0, 1, 0], [], []>} : vector<16x16xf32>, vector<16x16xf32>, vector<16x16xf32> -> vector<16x16xf32>
    %c0_30 = arith.constant 0 : index
    %c0_31 = arith.constant 0 : index
    %79 = vector.load %arg12[%c0_30, %c0_31] : memref<16x16xf32, #tpu.memory_space<vmem>>, vector<16x16xf32>
    %80 = arith.addf %78, %79 : vector<16x16xf32>
    %cst_32 = arith.constant dense<0xFF800000> : vector<16xf32>
    %81 = vector.multi_reduction <maximumf>, %80, %cst_32 [1] : vector<16x16xf32> to vector<16xf32>
    %82 = vector.shape_cast %81 : vector<16xf32> to vector<16x1xf32>
    %83 = vector.broadcast %82 : vector<16x1xf32> to vector<16x16xf32>
    %84 = arith.subf %80, %83 : vector<16x16xf32>
    %85 = math.exp %84 : vector<16x16xf32>
    %cst_33 = arith.constant dense<0.000000e+00> : vector<16xf32>
    %86 = vector.multi_reduction <add>, %85, %cst_33 [1] : vector<16x16xf32> to vector<16xf32>
    %87 = vector.shape_cast %86 : vector<16xf32> to vector<16x1xf32>
    %88 = vector.broadcast %87 : vector<16x1xf32> to vector<16x16xf32>
    %89 = arith.divf %85, %88 : vector<16x16xf32>
    %c0_34 = arith.constant 0 : index
    %c1 = arith.constant 1 : index
    %c0_35 = arith.constant 0 : index
    %c0_36 = arith.constant 0 : index
    %90 = vector.load %arg14[%c0_34, %c1, %c0_35, %c0_36] : memref<1x2x16x16xf32, #tpu.memory_space<vmem>>, vector<1x1x16x16xf32>
    %91 = vector.shape_cast %90 : vector<1x1x16x16xf32> to vector<16x16xf32>
    %92 = vector.shape_cast %89 : vector<16x16xf32> to vector<1x1x16x16xf32>
    tpu.vector_store %arg14[%c0_34, %c1, %c0_35, %c0_36], %92 {strides = array<i32>} : memref<1x2x16x16xf32, #tpu.memory_space<vmem>>, vector<1x1x16x16xf32>,
    %cst_37 = arith.constant dense<0.000000e+00> : vector<16x16xf32>
    %93 = tpu.matmul %89, %59, %cst_37 {dimension_numbers = #tpu.dot_dimension_numbers<[1], [0], [0], [1], [0, 0, 1, 1], [], []>} : vector<16x16xf32>, vector<16x16xf32>, vector<16x16xf32> -> vector<16x16xf32>
    %94 = tpu.concatenate %56, %93 in 1 : vector<16x16xf32>, vector<16x16xf32> -> vector<16x32xf32>
    %c0_38 = arith.constant 0 : index
    %c0_39 = arith.constant 0 : index
    %c0_40 = arith.constant 0 : index
    %95 = vector.load %arg8[%c0_38, %c0_39, %c0_40] : memref<1x32x32xf32, #tpu.memory_space<vmem>>, vector<1x32x32xf32>
    %96 = vector.shape_cast %95 : vector<1x32x32xf32> to vector<32x32xf32>
    %cst_41 = arith.constant dense<0.000000e+00> : vector<16x32xf32>
    %97 = tpu.matmul %94, %96, %cst_41 {dimension_numbers = #tpu.dot_dimension_numbers<[1], [0], [0], [1], [0, 0, 1, 1], [], []>} : vector<16x32xf32>, vector<32x32xf32>, vector<16x32xf32> -> vector<16x32xf32>
    %c0_i32 = arith.constant 0 : i32
    %98 = arith.cmpi eq, %arg2, %c0_i32 : i32
    %99 = arith.extui %98 : i1 to i32
    %c0_i32_42 = arith.constant 0 : i32
    %100 = arith.cmpi ne, %99, %c0_i32_42 : i32
    scf.if %100 {
      %cst_51 = arith.constant 0.000000e+00 : f32
      %110 = vector.broadcast %cst_51 : f32 to vector<1x16x32xf32>
      %c0_52 = arith.constant 0 : index
      %c0_53 = arith.constant 0 : index
      %c0_54 = arith.constant 0 : index
      %111 = vector.load %arg13[%c0_52, %c0_53, %c0_54] : memref<1x16x32xf32, #tpu.memory_space<vmem>>, vector<1x16x32xf32>
      tpu.vector_store %arg13[%c0_52, %c0_53, %c0_54], %110 {strides = array<i32>} : memref<1x16x32xf32, #tpu.memory_space<vmem>>, vector<1x16x32xf32>,
    } else {
    }
    %c0_43 = arith.constant 0 : index
    %c0_44 = arith.constant 0 : index
    %c0_45 = arith.constant 0 : index
    %101 = vector.load %arg13[%c0_43, %c0_44, %c0_45] : memref<1x16x32xf32, #tpu.memory_space<vmem>>, vector<1x16x32xf32>
    %102 = vector.shape_cast %101 : vector<1x16x32xf32> to vector<16x32xf32>
    %103 = arith.addf %102, %97 : vector<16x32xf32>
    %c0_46 = arith.constant 0 : index
    %c0_47 = arith.constant 0 : index
    %c0_48 = arith.constant 0 : index
    %104 = vector.load %arg13[%c0_46, %c0_47, %c0_48] : memref<1x16x32xf32, #tpu.memory_space<vmem>>, vector<1x16x32xf32>
    %105 = vector.shape_cast %104 : vector<1x16x32xf32> to vector<16x32xf32>
    %106 = vector.shape_cast %103 : vector<16x32xf32> to vector<1x16x32xf32>
    tpu.vector_store %arg13[%c0_46, %c0_47, %c0_48], %106 {strides = array<i32>} : memref<1x16x32xf32, #tpu.memory_space<vmem>>, vector<1x16x32xf32>,
    %c0_i32_49 = arith.constant 0 : i32
    %107 = arith.cmpi eq, %arg2, %c0_i32_49 : i32
    %108 = arith.extui %107 : i1 to i32
    %c0_i32_50 = arith.constant 0 : i32
    %109 = arith.cmpi ne, %108, %c0_i32_50 : i32
    scf.if %109 {
      %c0_51 = arith.constant 0 : index
      %c0_52 = arith.constant 0 : index
      %c0_53 = arith.constant 0 : index
      %110 = vector.load %arg13[%c0_51, %c0_52, %c0_53] : memref<1x16x32xf32, #tpu.memory_space<vmem>>, vector<1x16x32xf32>
      %111 = vector.shape_cast %110 : vector<1x16x32xf32> to vector<16x32xf32>
      %c0_54 = arith.constant 0 : index
      %c0_55 = arith.constant 0 : index
      %112 = vector.load %arg9[%c0_54, %c0_55] : memref<1x32xf32, #tpu.memory_space<vmem>>, vector<1x32xf32>
      %113 = vector.broadcast %112 : vector<1x32xf32> to vector<16x32xf32>
      %114 = arith.addf %111, %113 : vector<16x32xf32>
      %c0_56 = arith.constant 0 : index
      %c0_57 = arith.constant 0 : index
      %c0_58 = arith.constant 0 : index
      %115 = vector.load %arg13[%c0_56, %c0_57, %c0_58] : memref<1x16x32xf32, #tpu.memory_space<vmem>>, vector<1x16x32xf32>
      %116 = vector.shape_cast %115 : vector<1x16x32xf32> to vector<16x32xf32>
      %117 = vector.shape_cast %114 : vector<16x32xf32> to vector<1x16x32xf32>
      tpu.vector_store %arg13[%c0_56, %c0_57, %c0_58], %117 {strides = array<i32>} : memref<1x16x32xf32, #tpu.memory_space<vmem>>, vector<1x16x32xf32>,
    } else {
    }
    return
  }
  func.func @transform_0(%arg0: i32, %arg1: i32, %arg2: i32) -> (i32, i32, i32) {
    %c0_i32 = arith.constant 0 : i32
    %c0_i32_0 = arith.constant 0 : i32
    %c0_i32_1 = arith.constant 0 : i32
    return %arg0, %c0_i32, %c0_i32_0 : i32, i32, i32
  }
  func.func @transform_1(%arg0: i32, %arg1: i32, %arg2: i32) -> (i32, i32, i32) {
    %c0_i32 = arith.constant 0 : i32
    %c0_i32_0 = arith.constant 0 : i32
    %c0_i32_1 = arith.constant 0 : i32
    return %arg2, %c0_i32, %c0_i32_0 : i32, i32, i32
  }
  func.func @transform_2(%arg0: i32, %arg1: i32, %arg2: i32) -> (i32, i32, i32) {
    %c0_i32 = arith.constant 0 : i32
    %c0_i32_0 = arith.constant 0 : i32
    %c0_i32_1 = arith.constant 0 : i32
    return %arg2, %c0_i32, %c0_i32_0 : i32, i32, i32
  }
  func.func @transform_3(%arg0: i32, %arg1: i32, %arg2: i32) -> (i32, i32, i32) {
    %c0_i32 = arith.constant 0 : i32
    %c0_i32_0 = arith.constant 0 : i32
    %c0_i32_1 = arith.constant 0 : i32
    return %arg2, %c0_i32, %c0_i32_0 : i32, i32, i32
  }
  func.func @transform_4(%arg0: i32, %arg1: i32, %arg2: i32) -> (i32, i32, i32) {
    %c0_i32 = arith.constant 0 : i32
    %c0_i32_0 = arith.constant 0 : i32
    %c0_i32_1 = arith.constant 0 : i32
    return %arg2, %c0_i32, %c0_i32_0 : i32, i32, i32
  }
  func.func @transform_5(%arg0: i32, %arg1: i32, %arg2: i32) -> (i32, i32, i32) {
    %c0_i32 = arith.constant 0 : i32
    %c0_i32_0 = arith.constant 0 : i32
    %c0_i32_1 = arith.constant 0 : i32
    return %arg2, %c0_i32, %c0_i32_0 : i32, i32, i32
  }
  func.func @transform_6(%arg0: i32, %arg1: i32, %arg2: i32) -> (i32, i32) {
    %c0_i32 = arith.constant 0 : i32
    %c0_i32_0 = arith.constant 0 : i32
    %c0_i32_1 = arith.constant 0 : i32
    return %c0_i32, %c0_i32_0 : i32, i32
  }
  func.func @transform_7(%arg0: i32, %arg1: i32, %arg2: i32) -> (i32, i32) {
    %c0_i32 = arith.constant 0 : i32
    %c0_i32_0 = arith.constant 0 : i32
    %c0_i32_1 = arith.constant 0 : i32
    return %c0_i32, %c0_i32_0 : i32, i32
  }
  func.func @transform_8(%arg0: i32, %arg1: i32, %arg2: i32) -> (i32, i32) {
    %c0_i32 = arith.constant 0 : i32
    %c0_i32_0 = arith.constant 0 : i32
    %c0_i32_1 = arith.constant 0 : i32
    return %c0_i32, %c0_i32_0 : i32, i32
  }
  func.func @transform_9(%arg0: i32, %arg1: i32, %arg2: i32) -> (i32, i32) {
    %c0_i32 = arith.constant 0 : i32
    %c0_i32_0 = arith.constant 0 : i32
    return %arg1, %c0_i32 : i32, i32
  }
  func.func @transform_10(%arg0: i32, %arg1: i32, %arg2: i32) -> (i32, i32, i32) {
    %c0_i32 = arith.constant 0 : i32
    %c0_i32_0 = arith.constant 0 : i32
    return %arg0, %arg1, %c0_i32 : i32, i32, i32
  }
  func.func @transform_11(%arg0: i32, %arg1: i32, %arg2: i32) -> (i32, i32, i32, i32) {
    %c0_i32 = arith.constant 0 : i32
    %c0_i32_0 = arith.constant 0 : i32
    return %arg0, %arg2, %arg1, %c0_i32 : i32, i32, i32, i32
  }
}

</mosaic_0001>

<bundles_post_ra>
// kernel: tpu_custom_call.1
= control target key start
LH: loop header
LB: loop body
LE: loop exit
PB: predicated region body
PF: predicated region fallthrough
CT: control target
= control target key end

     0   :  { %s2660_s0 = inlined_call_operand.vmem [shape: f32[2,16,32], index: 0, kind: input, shape index: {}]   ;;  %s2661_s1 = inlined_call_operand.hbm [shape: f32[1,32,32], index: 1, kind: input, shape index: {}]   ;;  %s2662_s2 = inlined_call_operand.vmem [shape: f32[1,1,32], index: 2, kind: input, shape index: {}]   ;;  %s2663_s3 = inlined_call_operand.hbm [shape: f32[1,32,64], index: 3, kind: input, shape index: {}]   ;;  %s2664_s4 = inlined_call_operand.vmem [shape: f32[1,1,64], index: 4, kind: input, shape index: {}]   ;;  %s2665_s5 = inlined_call_operand.hbm [shape: f32[1,32,32], index: 5, kind: input, shape index: {}]   ;;  %s2666_s6 = inlined_call_operand.vmem [shape: f32[1,32], index: 6, kind: input, shape index: {}]   ;;  %s2667_s7 = inlined_call_operand.vmem [shape: f32[16,8], index: 7, kind: input, shape index: {}]   ;;  %s2668_s8 = inlined_call_operand.vmem [shape: f32[16,8], index: 8, kind: input, shape index: {}]   ;;  %s2669_s9 = inlined_call_operand.vmem [shape: f32[16,16], index: 9, kind: input, shape index: {}]   ;;  %s2670_s10 = inlined_call_operand.hbm [shape: f32[2,16,32], index: 10, kind: output, shape index: {0}]   ;;  %s2671_s11 = inlined_call_operand.hbm [shape: f32[2,2,16,16], index: 11, kind: output, shape index: {1}]  }
   0x1   :  { %2676 = sst [smem:[#allocation18_spill]] %s2660_s0 }
   0x2   :  { %17 = vsyncpa [#allocation3], 0 }
   0x3   :  { %18 = vsyncpa [#allocation6], 0 }
   0x4   :  { %19 = vsyncpa [#allocation4], 0 }
   0x5   :  { %21 = vsyncpa [#allocation4 + $0x1], 0 }
   0x6   :  { %22 = vsyncpa [#allocation10], 0 }
   0x7   :  { %24 = vsyncpa [#allocation10 + $0x1], 0  ;;  %s2229_s17 = smov 0   ;;  %s2231_s18 = smov 0  }
   0x8   :  { %s2233_s19 = smov 0   ;;  %s2235_s20 = smov 0  }
   0x9   :  { %s2237_s21 = smov 0   ;;  %s2239_s22 = smov 0  }
   0xa LB: > { %2677 = sst [smem:[#allocation15_spill]] %s2147_s21  ;;  %s1694_s23 = sadd.s32 4294967295, %s2151_s22   ;;  %s2151_s22 = sphi %s2239_s22, %s30_s22   ;;  %s2147_s21 = sphi %s2237_s21, %s2691_s21   ;;  %s2143_s20 = sphi %s2235_s20, %s2690_s20   ;;  %s2139_s19 = sphi %s2233_s19, %s2694_s19   ;;  %s2135_s18 = sphi %s2231_s18, %s2693_s18   ;;  %s2131_s17 = sphi %s2229_s17, %s2692_s17  }
   0xb   : > { %s1695_s24 = sadd.s32 4294967294, %s2151_s22   ;;  %s49_s25 = sadd.s32 1, %s2147_s21 }
   0xc   : > { %s303_s26 = sadd.s32 1, %s2139_s19  ;;  %p51_p0 = scmp.ge.s32.totalorder %s49_s25, 2 }
   0xd   : > { %p313_p1 = scmp.ne.s32.totalorder %s2139_s19, %s2135_s18  ;;  %p314_p2 = scmp.eq.s32.totalorder %s1694_s23, 1 }
   0xe   : > { %p319_p3 = scmp.ne.s32.totalorder %s2135_s18, %s2131_s17  ;;  %s2696_s25 = smov (%p51_p0, %s49_s25), 0 }
   0xf   : > { %2678 = sst [smem:[#allocation16_spill]] %s2696_s25  ;;  %p2269_p4 = por %p314_p2, %p313_p1 }
  0x10   : > { %p320_p5 = scmp.eq.s32.totalorder %s1695_s24, 1  ;;  %s298_s28 = ssub.s32 %s2147_s21, %s2696_s25 }
  0x11   : > { %p1696_p6 = scmp.ge.s32.totalorder %s2151_s22, 1  ;;  %p301_p7 = scmp.eq.s32.totalorder %s298_s28, 0 }
  0x12   : > { %p2276_p8 = por %p320_p5, %p319_p3  ;;  %p357_p9 = scmp.lt.s32.totalorder %s2151_s22, 3 }
  0x13   : > { %s2282_s30 = scalar_select %p301_p7, %s2139_s19, %s303_s26  }
  0x14   : > { %s2680_s29 = scalar_select %p2276_p8, 1, 0 }
  0x15   : > { %2681 = sst [smem:[#allocation17_spill]] %s2282_s30  ;;  %p2284_p10 = pnand %p1696_p6, %p357_p9 }
  0x16   : > { %p2288_p11 = scmp.eq.s32.totalorder %s1694_s23, 0  ;;  %s2153_s14 = smov [#allocation5]  }
  0x17   : > { %p1857_p12 = pneg %p2284_p10  ;;  %s394_s15 = sshll.u32 %s2153_s14, 4  ;;  %s395_s15 = int_to_ptr.vmem [resolvable:$true] %s394_s15 }
  0x18   : > { %s2154_s24 = smov [#allocation2]   ;;  %s1970_s23 = scalar_lea.vmem %s395_s15, 512 }
  0x19   : > { %p2296_p13 = pnand %p2288_p11, %p1857_p12  ;;  %s372_s26 = sshll.u32 %s2154_s24, 4  ;;  %s373_s26 = int_to_ptr.vmem [resolvable:$true] %s372_s26 }
  0x1a   : > { %p1971_p1 = scmp.ne.s32.totalorder %s395_s15, %s1970_s23  ;;  %p1978_p5 = scmp.lt.s32.totalorder %s395_s15, %s395_s15 }
  0x1b   : > { %p1961_p0 = pneg %p2296_p13  ;;  %p1979_p6 = scmp.lt.s32.totalorder %s1970_s23, %s1970_s23 }
  0x1d   : > { %p1973_p2 = pnand %p1971_p1, %p1961_p0  ;;  %p1980_p7 = por %p1979_p6, %p1978_p5 }
  0x1f   : > { %p1974_p3 = pneg %p1973_p2 }
  0x21   : > { %p1981_p9 = pnand %p1980_p7, %p1974_p3 }
  0x23   : > { %1984 = shalt.err (!%p1981_p9)
}
  0x24   : > { %s2155_s28 = smov 128   ;;  %s2156_s14 = smov 8  }
  0x25   : > { %1863 = dma.hbm_to_vmem [thread:$0]  (!%p2296_p13), %s2663_s3, 512, %s395_s15, [#allocation6], %s2155_s28, %s2155_s28, %s2156_s14  }
  0x26   : > { %s1996_s21 = scalar_lea.vmem %s373_s26, 512  ;;  %p2004_p8 = scmp.lt.s32.totalorder %s373_s26, %s373_s26 }
  0x27   : > { %p1997_p12 = scmp.ne.s32.totalorder %s373_s26, %s1996_s21  ;;  %p2005_p5 = scmp.lt.s32.totalorder %s1996_s21, %s1996_s21 }
  0x29   : > { %p1999_p1 = pnand %p1997_p12, %p1961_p0  ;;  %p2006_p3 = por %p2005_p5, %p2004_p8 }
  0x2b   : > { %p2000_p2 = pneg %p1999_p1 }
  0x2d   : > { %p2007_p6 = pnand %p2006_p3, %p2000_p2 }
  0x2f   : > { %2010 = shalt.err (!%p2007_p6)
}
  0x30   : > { %1860 = dma.hbm_to_vmem [thread:$0]  (!%p2296_p13), %s2661_s1, 512, %s373_s26, [#allocation3], %s2155_s28, %s2155_s28, %s2156_s14  }
  0x31   : > { %s2157_s25 = smov [#allocation7]  }
  0x32   : > { %s416_s15 = sshll.u32 %s2157_s25, 4  ;;  %s417_s15 = int_to_ptr.vmem [resolvable:$true] %s416_s15 }
  0x33   : > { %s2022_s24 = scalar_lea.vmem %s417_s15, 512  ;;  %p2030_p1 = scmp.lt.s32.totalorder %s417_s15, %s417_s15 }
  0x34   : > { %p2023_p7 = scmp.ne.s32.totalorder %s417_s15, %s2022_s24  ;;  %p2031_p8 = scmp.lt.s32.totalorder %s2022_s24, %s2022_s24 }
  0x36   : > { %p2025_p9 = pnand %p2023_p7, %p1961_p0  ;;  %p2032_p2 = por %p2031_p8, %p2030_p1 }
  0x38   : > { %p2026_p12 = pneg %p2025_p9 }
  0x3a   : > { %p2033_p5 = pnand %p2032_p2, %p2026_p12 }
  0x3c   : > { %2036 = shalt.err (!%p2033_p5)
}
  0x3d   : > { %1866 = dma.hbm_to_vmem [thread:$0]  (!%p2296_p13), %s2665_s5, 512, %s417_s15, [#allocation6], %s2155_s28, %s2155_s28, %s2156_s14  }
  0x3e   : > { %458 = sbr.rel (%p2284_p10) target bundleno = 2118 (0x846), region = 60 }
  0x43   : > { %2114 = dma.done.wait (%p2288_p11), [#allocation3], 512  }
  0x44   : > { %2116 = vsyncadd (%p2288_p11), [#allocation3], 4294966784 }
  0x45   : > { %2118 = dma.done.wait (%p2288_p11), [#allocation6], 1024  }
  0x46   : > { %2120 = vsyncadd (%p2288_p11), [#allocation6], 4294966272  ;;  %p522_p0 = scmp.lt.s32.totalorder %s2143_s20, 1  ;;  %v547_v0 = vld [vmem:[#allocation2 + $0x18] sm:$0xff]  ;;  %v546_v2 = vld [vmem:[#allocation2 + $0x10] sm:$0xff]  ;;  %s2685_s0 = sld [smem:[#allocation18_spill]] }
  0x47   : > { %v640_v1 = vld [vmem:[#allocation5 + $0x18] sm:$0xff]  ;;  %1780 = vmatprep.subr.mxu0 %v547_v0  ;;  %v639_v3 = vld [vmem:[#allocation5 + $0x10] sm:$0xff]  ;;  %v545_v4 = vld [vmem:[#allocation2 + $0x8] sm:$0xff]  ;;  %vm555_vm0 = vcmask 261120   ;;  %s2674_s24 = smov 8   ;;  %s2159_s23 = smov 120  }
  0x48   : > { %s523_s16 = scalar_select %p522_p0, %s2143_s20, 1  ;;  %1791 = vmatprep.subr.mxu1 %v640_v1  ;;  %1781 = vmatpush3.msra.mxu0 %v547_v0  ;;  %v638_v5 = vld [vmem:[#allocation5 + $0x8] sm:$0xff]  ;;  %v544_v6 = vld [vmem:[#allocation2] sm:$0xff]  ;;  %vm779_vm1 = vcmask 64512   ;;  %vm822_vm2 = vcmask 130048  }
  0x49   : > { %1792 = vmatpush3.msra.mxu1 %v640_v1  ;;  %1782 = vmatprep.subr.mxu0 %v546_v2  ;;  %v637_v7 = vld [vmem:[#allocation5] sm:$0xff]  ;;  %v2345_v10 = vld [vmem:[%s2667_s7 + $0x8] sm:$0xff]  ;;  %s2160_s25 = smov 24   ;;  %s2162_s12 = smov 96  }
  0x4a   : > { %s1743_s26 = sshll.u32 %s523_s16, 4  ;;  %1793 = vmatprep.subr.mxu1 %v639_v3  ;;  %1783 = vmatpush3.msra.mxu0 %v546_v2  ;;  %v2350_v11 = vld [vmem:[%s2668_s8 + $0x8] sm:$0xff]  ;;  %v2362_v12 = vld [vmem:[%s2667_s7] sm:$0xff]  ;;  %s2163_s28 = smov 112  }
  0x4b   : > { %1794 = vmatpush3.msra.mxu1 %v639_v3  ;;  %1784 = vmatprep.subr.mxu0 %v545_v4  ;;  %v2369_v13 = vld [vmem:[%s2668_s8] sm:$0xff]  ;;  %s1745_s30 = sshll.u32 %s2143_s20, 9 }
  0x4c   : > { %s526_s13 = scalar_lea.vmem %s2685_s0, %s1743_s26  ;;  %1795 = vmatprep.subr.mxu1 %v638_v5  ;;  %1785 = vmatpush3.msra.mxu0 %v545_v4  ;;  %v1715_v15 = vld [vmem:[%s2664_s4] ss:$0 sm:$0xff]  ;;  %v2440_v4 = vld [vmem:[%s2669_s9 + $0x8] sm:$0xff]  ;;  %s2161_s26 = smov 16  }
  0x4d   : > { %v542_v8 = vld [vmem:[%s526_s13] sm:$0xff]  ;;  %1796 = vmatpush3.msra.mxu1 %v638_v5  ;;  %1786 = vmatprep.subr.mxu0 %v544_v6  ;;  %v543_v9 = vld [vmem:[%s526_s13 + $0x8] sm:$0xff]  ;;  %s2506_s13 = sand.u32 1, %s2135_s18  }
  0x4e   : > { %1797 = vmatprep.subr.mxu1 %v637_v7  ;;  %1787 = vmatpush3.msra.mxu0 %v544_v6  ;;  %v1712_v19 = vld [vmem:[%s2662_s2] ss:$0 sm:$0xff]  ;;  %s1709_s14 = sshll.u32 %s2506_s13, 5  ;;  %s1708_s15 = sshll.u32 %s2506_s13, 4 }
  0x4f   : > { %1788 = vmatprep.mubr.msk.f32.mxu0 %vm555_vm0, %v542_v8  ;;  %1798 = vmatpush3.msra.mxu1 %v637_v7  ;;  %v2445_v6 = vld [vmem:[%s2669_s9] sm:$0xff]  ;;  %s2549_s21 = scalar_lea.vmem [#allocation8], %s1708_s15  ;;  %s2166_s15 = smov [#allocation9]  }
  0x50   : > { %1799 = vmatprep.mubr.msk.f32.mxu1 %vm555_vm0, %v542_v8  ;;  %1789 = vmatmul.mubr.msk.f32.vlgmr.msra.gmra.mxu0 %vm555_vm0, %v543_v9 }
  0x51   : > { %1800 = vmatmul.mubr.msk.f32.vlgmr.msra.gmra.mxu1 %vm555_vm0, %v543_v9  ;;  %755 = vrot.lane.b32.xlu0 %v2345_v10, %s2674_s24 }
  0x52   : > { %733 = vrot.lane.b32.xlu1 %v2350_v11, %s2674_s24 }
  0x55   : > { %753 = vrot.lane.b32.xlu0 %v2362_v12, %s2674_s24 }
  0x59   : > { %731 = vrot.lane.b32.xlu0 %v2369_v13, %s2674_s24 }
  0xc3   : > { %v756_v14 = vpop.permute.xlu0 %755 }
  0xc4   : > { %v734_v27 = vpop.permute.xlu1 %733 }
  0xc7   : > { %v754_v23 = vpop.permute.xlu0 %753 }
  0xcb   : > { %v732_v31 = vpop.permute.xlu0 %731 }
 0x110   : > { %v1790_v16 = vpop.f32.mrf.mxu0 }
 0x111   : > { %v1801_v17 = vpop.f32.mrf.mxu1  ;;  %v2389_v28 = vadd.f32 %v1790_v16, %v1712_v19 }
 0x112   : > { %v2376_v18 = vadd.f32 %v1801_v17, %v1715_v15  ;;  %v628_v20 = vpop.f32.mrf.mxu0 }
 0x113   : > { %v714_v21 = vpop.f32.mrf.mxu1  ;;  %v2381_v22 = vadd.f32 %v1712_v19, %v628_v20  ;;  %v760_v32 = vmul.f32 %v756_v14, %v2389_v28  ;;  %v738_v34 = vmul.f32 %v734_v27, %v2389_v28  ;;  %v750_v45 = vmul.f32 %v2350_v11, %v2389_v28 }
 0x114   : > { %v2383_v24 = vadd.f32 %v1715_v15, %v714_v21  ;;  %v799_v25 = vmul.f32 %v756_v14, %v2376_v18  ;;  %v785_v30 = vmul.f32 %v734_v27, %v2376_v18  ;;  %v797_v36 = vmul.f32 %v2350_v11, %v2376_v18 }
 0x115   : > { %v759_v26 = vmul.f32 %v754_v23, %v2381_v22  ;;  %v737_v35 = vmul.f32 %v732_v31, %v2381_v22  ;;  %v749_v38 = vmul.f32 %v2369_v13, %v2381_v22  ;;  %v783_v51 = vmul.f32 %v2345_v10, %v2376_v18 }
 0x116   : > { %804 = vrot.lane.b32.xlu1 %v799_v25, %s2159_s23  ;;  %v798_v29 = vmul.f32 %v754_v23, %v2383_v24  ;;  %v784_v33 = vmul.f32 %v732_v31, %v2383_v24  ;;  %v796_v42 = vmul.f32 %v2369_v13, %v2383_v24  ;;  %v727_v53 = vmul.f32 %v2362_v12, %v2381_v22 }
 0x117   : > { %763 = vrot.lane.b32.xlu0 %v759_v26, %s2159_s23  ;;  %v782_v57 = vmul.f32 %v2362_v12, %v2383_v24  ;;  %v728_v63 = vmul.f32 %v2345_v10, %v2389_v28 }
 0x11a   : > { %802 = vrot.lane.b32.xlu1 %v798_v29, %s2159_s23 }
 0x11b   : > { %790 = vrot.lane.b32.xlu0 %v785_v30, %s2159_s23 }
 0x11e   : > { %765 = vrot.lane.b32.xlu1 %v760_v32, %s2159_s23 }
 0x11f   : > { %788 = vrot.lane.b32.xlu0 %v784_v33, %s2159_s23 }
 0x122   : > { %743 = vrot.lane.b32.xlu1 %v738_v34, %s2159_s23 }
 0x123   : > { %741 = vrot.lane.b32.xlu0 %v737_v35, %s2159_s23 }
 0x188   : > { %v805_v37 = vpop.permute.xlu1 %804 }
 0x189   : > { %v809_v39 = vadd.f32 %v805_v37, %v797_v36  ;;  %v764_v40 = vpop.permute.xlu0 %763 }
 0x18a   : > { %v769_v41 = vadd.f32 %v764_v40, %v749_v38 }
 0x18b   : > { %814 = vrot.lane.b32.xlu1 %v809_v39, %s2674_s24 }
 0x18c   : > { %v803_v43 = vpop.permute.xlu1 %802  ;;  %773 = vrot.lane.b32.xlu0 %v769_v41, %s2674_s24 }
 0x18d   : > { %v808_v44 = vadd.f32 %v803_v43, %v796_v42  ;;  %v791_v48 = vpop.permute.xlu0 %790 }
 0x18e   : > { %v795_v54 = vsub.f32 %v783_v51, %v791_v48 }
 0x18f   : > { %812 = vrot.lane.b32.xlu1 %v808_v44, %s2674_s24 }
 0x190   : > { %v766_v46 = vpop.permute.xlu1 %765  ;;  %1033 = vrot.lane.b32.xlu0 %v2350_v11, %s2160_s25 }
 0x191   : > { %v770_v47 = vadd.f32 %v766_v46, %v750_v45  ;;  %v789_v49 = vpop.permute.xlu0 %788 }
 0x192   : > { %v794_v61 = vsub.f32 %v782_v57, %v789_v49 }
 0x193   : > { %775 = vrot.lane.b32.xlu1 %v770_v47, %s2674_s24  ;;  %s2041_s24 = sshll.u32 %s2166_s15, 4  ;;  %s2042_s24 = int_to_ptr.vmem [resolvable:$false] %s2041_s24 }
 0x194   : > { %v744_v50 = vpop.permute.xlu1 %743  ;;  %s2043_s0 = scalar_lea.vmem %s2042_s24, 1024 }
 0x195   : > { %v742_v52 = vpop.permute.xlu0 %741  ;;  %v748_v1 = vsub.f32 %v728_v63, %v744_v50 }
 0x196   : > { %v747_v55 = vsub.f32 %v727_v53, %v742_v52 }
 0x197   : > { %1059 = vrot.lane.b32.xlu1 %v2345_v10, %s2160_s25 }
 0x19b   : > { %1031 = vrot.lane.b32.xlu1 %v2369_v13, %s2160_s25 }
 0x19f   : > { %1057 = vrot.lane.b32.xlu1 %v2362_v12, %s2160_s25  ;;  %s2164_s25 = smov 80  }
 0x1fd   : > { %v815_v56 = vpop.permute.xlu1 %814 }
 0x1fe   : > { %v819_v58 = vsel %vm779_vm1, %v795_v54, %v815_v56  ;;  %v774_v59 = vpop.permute.xlu0 %773 }
 0x1ff   : > { %1802 = vmatprep.subr.msk.mxu0 %vm822_vm2, %v819_v58  ;;  %v780_v60 = vsel %vm779_vm1, %v747_v55, %v774_v59 }
 0x200   : > { %1803 = vmatpush3.xpose.msk.msra.mxu0 %vm822_vm2, %v819_v58  ;;  %1806 = vmatprep.mubr.msk.f32.mxu0 %vm822_vm2, %v780_v60 }
 0x201   : > { %v813_v62 = vpop.permute.xlu1 %812 }
 0x202   : > { %v818_v0 = vsel %vm779_vm1, %v794_v61, %v813_v62  ;;  %v1034_v20 = vpop.permute.xlu0 %1033 }
 0x203   : > { %1804 = vmatprep.subr.msk.mxu0 %vm822_vm2, %v818_v0  ;;  %v1096_v23 = vmul.f32 %v1034_v20, %v2376_v18  ;;  %v1038_v27 = vmul.f32 %v1034_v20, %v2389_v28 }
 0x204   : > { %1805 = vmatpush3.xpose.msk.msra.mxu0 %vm822_vm2, %v818_v0 }
 0x205   : > { %v776_v2 = vpop.permute.xlu1 %775 }
 0x206   : > { %v781_v3 = vsel %vm779_vm1, %v748_v1, %v776_v2 }
 0x207   : > { %1807 = vmatmul.mubr.msk.f32.vlgmr.msra.gmra.mxu0 %vm822_vm2, %v781_v3 }
 0x209   : > { %v1060_v16 = vpop.permute.xlu1 %1059 }
 0x20d   : > { %v1032_v17 = vpop.permute.xlu1 %1031 }
 0x20e   : > { %v1037_v26 = vmul.f32 %v1032_v17, %v2381_v22 }
 0x211   : > { %v1058_v19 = vpop.permute.xlu1 %1057 }
 0x212   : > { %v1109_v21 = vmul.f32 %v1058_v19, %v2383_v24  ;;  %v1063_v25 = vmul.f32 %v1058_v19, %v2381_v22 }
 0x2c7   : > { %v1808_v5 = vpop.f32.mrf.mxu0 }
 0x2c8   : > { %v2448_v7 = vadd.f32 %v1808_v5, %v2440_v4 }
 0x2c9   : > { %v901_v8 = vpop.f32.mrf.mxu0 }
 0x2ca   : > { %v2451_v9 = vadd.f32 %v901_v8, %v2445_v6  ;;  %v913_v14 = vsel %vm822_vm2, %v2448_v7, -inf }
 0x2cb   : > { %914 = vmax.xlane.f32.xlu1 %v913_v14 }
 0x2cc   : > { %v910_v15 = vsel %vm822_vm2, %v2451_v9, -inf }
 0x2cd   : > { %911 = vmax.xlane.f32.xlu0 %v910_v15 }
 0x2dc   : > { %1051 = vrot.lane.b32.xlu1 %v2350_v11, %s2161_s26  ;;  %v1110_v11 = vmul.f32 %v1060_v16, %v2376_v18 }
 0x2e0   : > { %1049 = vrot.lane.b32.xlu1 %v2369_v13, %s2161_s26  ;;  %v1064_v13 = vmul.f32 %v1060_v16, %v2389_v28 }
 0x2e3   : > { %1025 = vrot.lane.b32.xlu0 %v2345_v10, %s2161_s26  ;;  %v1095_v10 = vmul.f32 %v1032_v17, %v2383_v24 }
 0x2e4   : > { %1113 = vrot.lane.b32.xlu1 %v1109_v21, %s2159_s23 }
 0x2e7   : > { %1101 = vrot.lane.b32.xlu0 %v1096_v23, %s2159_s23 }
 0x2e8   : > { %1067 = vrot.lane.b32.xlu1 %v1063_v25, %s2159_s23 }
 0x2eb   : > { %1115 = vrot.lane.b32.xlu0 %v1110_v11, %s2159_s23 }
 0x2ec   : > { %1069 = vrot.lane.b32.xlu1 %v1064_v13, %s2159_s23 }
 0x2ef   : > { %1023 = vrot.lane.b32.xlu0 %v2362_v12, %s2161_s26 }
 0x2f0   : > { %936 = vrot.lane.b32.xlu1 %v2383_v24, %s2162_s12 }
 0x2f3   : > { %1099 = vrot.lane.b32.xlu0 %v1095_v10, %s2159_s23 }
 0x2f7   : > { %1041 = vrot.lane.b32.xlu0 %v1037_v26, %s2159_s23 }
 0x2fb   : > { %1043 = vrot.lane.b32.xlu0 %v1038_v27, %s2159_s23 }
 0x2ff   : > { %938 = vrot.lane.b32.xlu0 %v2376_v18, %s2162_s12  ;;  %s2559_s12 = scalar_lea.hbm %s2671_s11, %s1745_s30 }
 0x354   : > { %v915_v29 = vpop.xlane.xlu1 %914 }
 0x355   : > { %v917_v51 = vsub.f32 %v2448_v7, %v915_v29 }
 0x356   : > { %v912_v30 = vpop.xlane.xlu0 %911 }
 0x357   : > { %v916_v50 = vsub.f32 %v2451_v9, %v912_v30  ;;  %v920_v54 = vmul.f32 1.442695, %v917_v51  ;;  %v1350_v51 = vld [vmem:[#allocation7] sm:$0xff] }
 0x358   : > { %v1052_v12 = vpop.permute.xlu1 %1051 }
 0x359   : > { %v1108_v36 = vmul.f32 %v1052_v12, %v2376_v18  ;;  %v918_v53 = vmul.f32 1.442695, %v916_v50  ;;  %v1056_v62 = vmul.f32 %v1052_v12, %v2389_v28  ;;  %v1351_v50 = vld [vmem:[#allocation7 + $0x8] sm:$0xff] }
 0x35a   : > { %v1026_v31 = vpop.permute.xlu0 %1025 }
 0x35b   : > { %v1094_v32 = vmul.f32 %v1026_v31, %v2376_v18  ;;  %1943 = vpow2.f32 %v918_v53  ;;  %v1030_v2 = vmul.f32 %v1026_v31, %v2389_v28 }
 0x35c   : > { %v1050_v33 = vpop.permute.xlu1 %1049  ;;  %1945 = vpow2.f32 %v920_v54 }
 0x35d   : > { %v1107_v40 = vmul.f32 %v1050_v33, %v2383_v24  ;;  %v1055_v60 = vmul.f32 %v1050_v33, %v2381_v22 }
 0x35e   : > { %v1102_v34 = vpop.permute.xlu0 %1101 }
 0x35f   : > { %v1106_v35 = vsub.f32 %v1094_v32, %v1102_v34 }
 0x360   : > { %v1114_v39 = vpop.permute.xlu1 %1113 }
 0x361   : > { %1125 = vrot.lane.b32.xlu0 %v1106_v35, %s2163_s28  ;;  %v1119_v42 = vadd.f32 %v1114_v39, %v1107_v40 }
 0x362   : > { %v1116_v37 = vpop.permute.xlu0 %1115 }
 0x363   : > { %v1120_v38 = vadd.f32 %v1116_v37, %v1108_v36 }
 0x364   : > { %v1068_v46 = vpop.permute.xlu1 %1067 }
 0x365   : > { %1133 = vrot.lane.b32.xlu1 %v1120_v38, %s2159_s23  ;;  %v1073_v61 = vadd.f32 %v1068_v46, %v1055_v60 }
 0x366   : > { %v1024_v41 = vpop.permute.xlu0 %1023 }
 0x367   : > { %v1093_v43 = vmul.f32 %v1024_v41, %v2383_v24  ;;  %v1029_v63 = vmul.f32 %v1024_v41, %v2381_v22 }
 0x368   : > { %v1070_v48 = vpop.permute.xlu1 %1069  ;;  %v1944_v56 = vpop.eup %1943 }
 0x369   : > { %1131 = vrot.lane.b32.xlu1 %v1119_v42, %s2159_s23  ;;  %v1946_v57 = vpop.eup %1945  ;;  %v922_v58 = vsel %vm822_vm2, %v1944_v56, 0.0  ;;  %v1074_v0 = vadd.f32 %v1070_v48, %v1056_v62 }
 0x36a   : > { %v1100_v44 = vpop.permute.xlu0 %1099  ;;  %v925_v59 = vsel %vm822_vm2, %v1946_v57, 0.0 }
 0x36b   : > { %v1105_v45 = vsub.f32 %v1093_v43, %v1100_v44 }
 0x36c   : > { %v937_v55 = vpop.permute.xlu1 %936 }
 0x36d   : > { %1123 = vrot.lane.b32.xlu0 %v1105_v45, %s2163_s28 }
 0x36e   : > { %v1042_v47 = vpop.permute.xlu0 %1041 }
 0x36f   : > { %v1047_v1 = vsub.f32 %v1029_v63, %v1042_v47 }
 0x372   : > { %v1044_v49 = vpop.permute.xlu0 %1043 }
 0x373   : > { %v1048_v3 = vsub.f32 %v1030_v2, %v1044_v49  ;;  %v1352_v49 = vld [vmem:[#allocation7 + $0x10] sm:$0xff] }
 0x376   : > { %v939_v52 = vpop.permute.xlu0 %938 }
 0x377   : > { %1809 = vmatprep.subr.mxu1 %v939_v52 }
 0x378   : > { %1810 = vmatpush3.msra.mxu1 %v939_v52 }
 0x379   : > { %1811 = vmatprep.subr.mxu1 %v937_v55 }
 0x37a   : > { %1812 = vmatpush3.msra.mxu1 %v937_v55 }
 0x38c   : > { %923 = vadd.xlane.f32.xlu0 %v922_v58  ;;  %v2165_v58 = vmov 0.0  }
 0x38d   : > { %926 = vadd.xlane.f32.xlu1 %v925_v59  ;;  %1440 = vst.msk [vmem:[%s2549_s21 + $0x8] sm:$0xff] %vm555_vm0, %v2165_v58  ;;  %1439 = vst.msk [vmem:[%s2549_s21] sm:$0xff] %vm555_vm0, %v2165_v58 }
 0x39e   : > { %1085 = vrot.lane.b32.xlu1 %v1073_v61, %s2159_s23 }
 0x3a2   : > { %1087 = vrot.lane.b32.xlu1 %v1074_v0, %s2159_s23  ;;  %1077 = vrot.lane.b32.xlu0 %v1047_v1, %s2163_s28  ;;  %s2509_s23 = scalar_lea.vmem [#allocation9], %s1709_s14 }
 0x3a6   : > { %1079 = vrot.lane.b32.xlu0 %v1048_v3, %s2163_s28  ;;  %s1505_s28 = sshll.u32 %s2509_s23, 4  ;;  %s2562_s28 = int_to_ptr.vmem [resolvable:$true] %s1505_s28 }
 0x3a7   : > { %p2044_p3 = scmp.lt.s32.totalorder %s2562_s28, %s2042_s24 }
 0x3d3   : > { %v1126_v5 = vpop.permute.xlu0 %1125 }
 0x3d7   : > { %v1134_v7 = vpop.permute.xlu1 %1133 }
 0x3d8   : > { %v1138_v8 = vsel %vm779_vm1, %v1126_v5, %v1134_v7 }
 0x3d9   : > { %1816 = vmatprep.subr.msk.mxu1 %vm822_vm2, %v1138_v8 }
 0x3db   : > { %v1132_v9 = vpop.permute.xlu1 %1131 }
 0x3df   : > { %v1124_v22 = vpop.permute.xlu0 %1123 }
 0x3e0   : > { %v1137_v25 = vsel %vm779_vm1, %v1124_v22, %v1132_v9 }
 0x415   : > { %v924_v14 = vpop.xlane.xlu0 %923 }
 0x416   : > { %1947 = vrcp.f32 %v924_v14  ;;  %v927_v15 = vpop.xlane.xlu1 %926 }
 0x417   : > { %1949 = vrcp.f32 %v927_v15 }
 0x419   : > { %v1078_v17 = vpop.permute.xlu0 %1077 }
 0x41a   : > { %v1086_v19 = vpop.permute.xlu1 %1085 }
 0x41b   : > { %v1091_v23 = vsel %vm779_vm1, %v1078_v17, %v1086_v19 }
 0x41d   : > { %v1080_v11 = vpop.permute.xlu0 %1079 }
 0x41e   : > { %v1088_v13 = vpop.permute.xlu1 %1087 }
 0x41f   : > { %v1092_v10 = vsel %vm779_vm1, %v1080_v11, %v1088_v13 }
 0x423   : > { %v1948_v28 = vpop.eup %1947 }
 0x424   : > { %v1950_v16 = vpop.eup %1949  ;;  %v929_v20 = vmul.f32 %v1948_v28, %v1944_v56 }
 0x425   : > { %v931_v21 = vmul.f32 %v1950_v16, %v1946_v57 }
 0x426   : > { %932 = vst.msk [vmem:[%s2509_s23] sm:$0xff] %vm822_vm2, %v929_v20  ;;  %1813 = vmatprep.mubr.msk.f32.mxu1 %vm822_vm2, %v929_v20 }
 0x427   : > { %933 = vst.msk [vmem:[%s2509_s23 + $0x8] sm:$0xff] %vm822_vm2, %v931_v21  ;;  %1814 = vmatmul.mubr.msk.f32.vlgmr.msra.gmra.mxu1 %vm822_vm2, %v931_v21 }
 0x428   : > { %1817 = vmatpush3.xpose.msk.msra.mxu1 %vm822_vm2, %v1138_v8  ;;  %1820 = vmatprep.mubr.msk.f32.mxu1 %vm822_vm2, %v1091_v23 }
 0x429   : > { %1818 = vmatprep.subr.msk.mxu1 %vm822_vm2, %v1137_v25 }
 0x42c   : > { %1819 = vmatpush3.xpose.msk.msra.mxu1 %vm822_vm2, %v1137_v25 }
 0x42f   : > { %1821 = vmatmul.mubr.msk.f32.vlgmr.msra.gmra.mxu1 %vm822_vm2, %v1092_v10 }
 0x4e7   : > { %v2525_v26 = vpop.f32.mrf.mxu1 }
 0x4e9   : > { %v1014_v27 = vpop.f32.mrf.mxu1 }
 0x4ef   : > { %v1822_v29 = vpop.f32.mrf.mxu1 }
 0x4f0   : > { %v1225_v30 = vadd.f32 %v1822_v29, %v2440_v4 }
 0x4f1   : > { %v1219_v12 = vpop.f32.mrf.mxu1 }
 0x4f2   : > { %v1220_v31 = vadd.f32 %v1219_v12, %v2445_v6  ;;  %v1231_v32 = vsel %vm822_vm2, %v1225_v30, -inf }
 0x4f3   : > { %1232 = vmax.xlane.f32.xlu1 %v1231_v32 }
 0x4f4   : > { %v1228_v33 = vsel %vm822_vm2, %v1220_v31, -inf }
 0x4f5   : > { %1229 = vmax.xlane.f32.xlu0 %v1228_v33 }
 0x504   : > { %1255 = vrot.lane.b32.xlu1 %v2376_v18, %s2164_s25 }
 0x57c   : > { %v1233_v34 = vpop.xlane.xlu1 %1232 }
 0x57d   : > { %v1235_v35 = vsub.f32 %v1225_v30, %v1233_v34 }
 0x57e   : > { %v1230_v36 = vpop.xlane.xlu0 %1229 }
 0x57f   : > { %v1238_v37 = vmul.f32 1.442695, %v1235_v35  ;;  %v1234_v38 = vsub.f32 %v1220_v31, %v1230_v36 }
 0x580   : > { %v1256_v39 = vpop.permute.xlu1 %1255 }
 0x581   : > { %1951 = vpow2.f32 %v1238_v37  ;;  %v1236_v4 = vmul.f32 1.442695, %v1234_v38  ;;  %1823 = vmatprep.subr.mxu1 %v1256_v39 }
 0x582   : > { %1824 = vmatpush3.msra.mxu1 %v1256_v39 }
 0x583   : > { %1953 = vpow2.f32 %v1236_v4 }
 0x58e   : > { %v1952_v6 = vpop.eup %1951 }
 0x58f   : > { %v1243_v40 = vsel %vm822_vm2, %v1952_v6, 0.0 }
 0x590   : > { %v1954_v41 = vpop.eup %1953  ;;  %1244 = vadd.xlane.f32.xlu0 %v1243_v40 }
 0x591   : > { %v1240_v18 = vsel %vm822_vm2, %v1954_v41, 0.0 }
 0x594   : > { %1241 = vadd.xlane.f32.xlu0 %v1240_v18 }
 0x5aa   : > { %1253 = vrot.lane.b32.xlu0 %v2383_v24, %s2164_s25  ;;  %v1353_v24 = vld [vmem:[#allocation7 + $0x18] sm:$0xff]  ;;  %s2037_s25 = scalar_lea.vmem %s2562_s28, 512 }
 0x5ab   : > { %1830 = vmatprep.subr.mxu0 %v1353_v24  ;;  %p2038_p10 = scmp.ne.s32.totalorder %s2562_s28, %s2037_s25  ;;  %p2045_p6 = scmp.lt.s32.totalorder %s2043_s0, %s2037_s25 }
 0x5ac   : > { %1831 = vmatpush3.msra.mxu0 %v1353_v24 }
 0x5ad   : > { %1832 = vmatprep.subr.mxu0 %v1352_v49  ;;  %p2039_p11 = pnand %p2038_p10, %p2269_p4  ;;  %p2046_p7 = por %p2045_p6, %p2044_p3 }
 0x5ae   : > { %1833 = vmatpush3.msra.mxu0 %v1352_v49 }
 0x5af   : > { %1834 = vmatprep.subr.mxu0 %v1351_v50  ;;  %p2040_p13 = pneg %p2039_p11 }
 0x5b0   : > { %1835 = vmatpush3.msra.mxu0 %v1351_v50 }
 0x5b1   : > { %1836 = vmatprep.subr.mxu0 %v1350_v51  ;;  %p2047_p9 = pnand %p2046_p7, %p2040_p13 }
 0x5b2   : > { %1837 = vmatpush3.msra.mxu0 %v1350_v51 }
 0x619   : > { %v1245_v42 = vpop.xlane.xlu0 %1244 }
 0x61a   : > { %1955 = vrcp.f32 %v1245_v42 }
 0x61d   : > { %v1242_v43 = vpop.xlane.xlu0 %1241 }
 0x61e   : > { %1957 = vrcp.f32 %v1242_v43 }
 0x621   : > { %v1254_v44 = vpop.permute.xlu0 %1253 }
 0x622   : > { %1825 = vmatprep.subr.mxu1 %v1254_v44 }
 0x623   : > { %1826 = vmatpush3.msra.mxu1 %v1254_v44 }
 0x627   : > { %v1956_v45 = vpop.eup %1955 }
 0x628   : > { %v1249_v46 = vmul.f32 %v1956_v45, %v1952_v6 }
 0x62a   : > { %1729 = vst.msk [vmem:[%s2509_s23 + $0x18] sm:$0xff] %vm822_vm2, %v1249_v46 }
 0x62b   : > { %v1958_v47 = vpop.eup %1957 }
 0x62c   : > { %v1247_v48 = vmul.f32 %v1958_v47, %v1954_v41 }
 0x62e   : > { %1728 = vst.msk [vmem:[%s2509_s23 + $0x10] sm:$0xff] %vm822_vm2, %v1247_v48  ;;  %1827 = vmatprep.mubr.msk.f32.mxu1 %vm822_vm2, %v1247_v48 }
 0x62f   : > { %1828 = vmatmul.mubr.msk.f32.vlgmr.msra.gmra.mxu1 %vm822_vm2, %v1249_v46 }
 0x6ef   : > { %v1829_v52 = vpop.f32.mrf.mxu1 }
 0x6f1   : > { %v1331_v53 = vpop.f32.mrf.mxu1 }
 0x6f2   : > { %1342 = vrot.lane.b32.xlu1 %v1331_v53, %s2161_s26 }
 0x6f6   : > { %1344 = vrot.lane.b32.xlu1 %v1829_v52, %s2161_s26 }
 0x764   : > { %v1343_v54 = vpop.permute.xlu1 %1342 }
 0x765   : > { %v1348_v55 = vsel %vm822_vm2, %v1014_v27, %v1343_v54 }
 0x766   : > { %1838 = vmatprep.mubr.msk.f32.mxu0 %vm555_vm0, %v1348_v55 }
 0x768   : > { %v1345_v56 = vpop.permute.xlu1 %1344 }
 0x769   : > { %v1349_v57 = vsel %vm822_vm2, %v2525_v26, %v1345_v56 }
 0x76a   : > { %1839 = vmatmul.mubr.msk.f32.vlgmr.msra.gmra.mxu0 %vm555_vm0, %v1349_v57 }
 0x76b   : > { %2050 = shalt.err (!%p2047_p9)
}
 0x76c   : > { %s2051_s23 = scalar_lea.hbm %s2559_s12, 512  ;;  %s2055_s26 = scalar_lea.hbm %s2671_s11, 1024 }
 0x76d   : > { %p2052_p12 = scmp.ne.s32.totalorder %s2559_s12, %s2051_s23  ;;  %p2056_p2 = scmp.lt.s32.totalorder %s2559_s12, %s2671_s11 }
 0x76e   : > { %p2057_p5 = scmp.lt.s32.totalorder %s2055_s26, %s2051_s23 }
 0x76f   : > { %p2053_p1 = pnand %p2052_p12, %p2269_p4 }
 0x770   : > { %p2058_p0 = por %p2057_p5, %p2056_p2 }
 0x771   : > { %p2054_p8 = pneg %p2053_p1 }
 0x773   : > { %p2059_p10 = pnand %p2058_p0, %p2054_p8 }
 0x775   : > { %2062 = shalt.err (!%p2059_p10)
}
 0x776   : > { %s2167_s0 = smov 128   ;;  %s2686_s24 = smov 8   ;;  %v1442_v59 = vld [vmem:[%s2549_s21 + $0x8] sm:$0xff]  ;;  %v1441_v61 = vld [vmem:[%s2549_s21] sm:$0xff] }
 0x777   : > { %s2687_s25 = scalar_lea.sflag [#allocation10], %s2506_s13  ;;  %v1734_v1 = vld [vmem:[%s2666_s6] ss:$0 sm:$0xff]  ;;  %s1464_s15 = scalar_lea.sflag [#allocation4], %s2506_s13 }
 0x778   : > { %1854 = dma.vmem_to_hbm [thread:$0]  (%p2269_p4), %s2562_s28, 512, %s2559_s12, %s2687_s25, %s2167_s0, %s2167_s0, %s2686_s24  }
 0x779   : > { %s1744_s12 = sshll.u32 %s2143_s20, 8  ;;  %s1484_s28 = sshll.u32 %s2549_s21, 4  ;;  %s2610_s28 = int_to_ptr.vmem [resolvable:$true] %s1484_s28 }
 0x77a   : > { %s2608_s26 = scalar_lea.hbm %s2670_s10, %s1744_s12  ;;  %s2063_s20 = scalar_lea.vmem %s2610_s28, 256 }
 0x77b   : > { %p2064_p11 = scmp.ne.s32.totalorder %s2610_s28, %s2063_s20  ;;  %s2168_s25 = smov [#allocation8]  }
 0x77c   : > { %s2067_s14 = sshll.u32 %s2168_s25, 4  ;;  %s2068_s14 = int_to_ptr.vmem [resolvable:$false] %s2067_s14 }
 0x77d   : > { %p2065_p13 = pnand %p2064_p11, %p2269_p4  ;;  %s2069_s23 = scalar_lea.vmem %s2068_s14, 512 }
 0x77e   : > { %p2070_p6 = scmp.lt.s32.totalorder %s2610_s28, %s2068_s14  ;;  %p2071_p7 = scmp.lt.s32.totalorder %s2069_s23, %s2063_s20 }
 0x77f   : > { %p2066_p3 = pneg %p2065_p13 }
 0x780   : > { %p2072_p9 = por %p2071_p7, %p2070_p6 }
 0x782   : > { %p2073_p12 = pnand %p2072_p9, %p2066_p3 }
 0x82a   : > { %v1840_v60 = vpop.f32.mrf.mxu0 }
 0x82b   : > { %v1444_v62 = vadd.f32 %v1840_v60, %v1442_v59 }
 0x82c   : > { %v1426_v63 = vpop.f32.mrf.mxu0 }
 0x82d   : > { %1446 = vst.msk [vmem:[%s2549_s21 + $0x8] sm:$0xff] %vm555_vm0, %v1444_v62  ;;  %v1443_v0 = vadd.f32 %v1441_v61, %v1426_v63 }
 0x82f   : > { %1445 = vst.msk [vmem:[%s2549_s21] sm:$0xff] %vm555_vm0, %v1443_v0 }
 0x834   : > { %v1451_v2 = vld [vmem:[%s2549_s21 + $0x8] sm:$0xff] }
 0x835   : > { %v1460_v3 = vadd.f32 %v1734_v1, %v1451_v2 }
 0x836   : > { %v1450_v5 = vld [vmem:[%s2549_s21] sm:$0xff] }
 0x837   : > { %v1459_v7 = vadd.f32 %v1734_v1, %v1450_v5  ;;  %1462 = vst.msk [vmem:[%s2549_s21 + $0x8] sm:$0xff] %vm555_vm0, %v1460_v3 }
 0x839   : > { %1461 = vst.msk [vmem:[%s2549_s21] sm:$0xff] %vm555_vm0, %v1459_v7 }
 0x83a   : > { %2076 = shalt.err (!%p2073_p12)
}
 0x83b   : > { %s2077_s21 = scalar_lea.hbm %s2608_s26, 256  ;;  %s2081_s30 = scalar_lea.hbm %s2670_s10, 512 }
 0x83c   : > { %p2078_p1 = scmp.ne.s32.totalorder %s2608_s26, %s2077_s21  ;;  %p2082_p5 = scmp.lt.s32.totalorder %s2608_s26, %s2670_s10 }
 0x83d   : > { %p2083_p0 = scmp.lt.s32.totalorder %s2081_s30, %s2077_s21 }
 0x83e   : > { %p2079_p8 = pnand %p2078_p1, %p2269_p4 }
 0x83f   : > { %p2084_p10 = por %p2083_p0, %p2082_p5 }
 0x840   : > { %p2080_p2 = pneg %p2079_p8 }
 0x842   : > { %p2085_p11 = pnand %p2084_p10, %p2080_p2 }
 0x844   : > { %2088 = shalt.err (!%p2085_p11)
}
 0x845   : > { %1853 = dma.vmem_to_hbm [thread:$0]  (%p2269_p4), %s2610_s28, 256, %s2608_s26, %s1464_s15, %s2167_s0, %s2167_s0, %s2686_s24  }
 0x846 PF: > { %p1880_p13 = scmp.ge.s32.totalorder %s2151_s22, 2  ;;  %s1520_s20 = sand.u32 1, %s2131_s17  }
 0x847   : > { %p2688_p3 = scmp.ne.s32.totalorder %s2680_s29, 0  ;;  %s1521_s14 = scalar_lea.sflag [#allocation4], %s1520_s20 }
 0x849   : > { %p1868_p6 = pnand %p1880_p13, %p2688_p3 }
 0x84b   : > { %p1869_p7 = pneg %p1868_p6 }
 0x84d   : > { %2122 = dma.done.wait (%p1869_p7), %s1521_s14, 256  }
 0x84e   : > { %2124 = vsyncadd (%p1869_p7), %s1521_s14, 4294967040  ;;  %s1530_s23 = scalar_lea.sflag [#allocation10], %s1520_s20 }
 0x84f   : > { %2126 = dma.done.wait (%p1869_p7), %s1530_s23, 512  }
 0x850   : > { %2128 = vsyncadd (%p1869_p7), %s1530_s23, 4294966784  ;;  %s30_s22 = sadd.s32 1, %s2151_s22   ;;  %s2689_s27 = sld [smem:[#allocation17_spill]] }
 0x851   : > { %p27_p9 = scmp.ge.s32.totalorder %s30_s22, 4   ;;  %s2690_s20 = sld [smem:[#allocation15_spill]] }
 0x852   : > { %s2691_s21 = sld [smem:[#allocation16_spill]]  ;;  %s2692_s17 = smov %s2135_s18 }
 0x853   : > { %s2693_s18 = smov %s2139_s19  ;;  %29 = sbr.rel (!%p27_p9) target bundleno = 10 (0xa), region = 146 }
 0x856   : > { %s2694_s19 = smov %s2689_s27 }
 0x858   :  { %1535 = vsyncpa [#allocation3], 1 }
 0x859   :  { %1537 = vsyncpa [#allocation3 + $0x1], 1 }
 0x85a   :  { %1538 = vsyncpa [#allocation6], 1 }
 0x85b   :  { %1539 = vsyncpa [#allocation4], 1 }
 0x85c   :  { %1541 = vsyncpa [#allocation4 + $0x1], 1 }
 0x85d   :  { %1542 = vsyncpa [#allocation10], 1 }
 0x85e   :  { %1544 = vsyncpa [#allocation10 + $0x1], 1 }

</bundles_post_ra>
